<compile_context>
chip_gen: v5e
topology: v5e:2x2
jax: 0.10.0
libtpu: 0.0.40
codegen_flags: <defaults>
</compile_context>

<pallas_src>
import jax
import jax.numpy as jnp
from jax.experimental import pallas as pl
from jax.experimental.pallas import tpu as pltpu


def _round_up(x, m):
    return (x + m - 1) // m * m


def _embed_kernel(x_ref, w_ref, add_ref, o_ref):
    # x_ref:   (bb, tp, K)  im2col'd pixel patches (bb images x tp patch rows).
    # w_ref:   (K, D)       patch-embedding conv weight flattened (K padded).
    # add_ref: (tp, D)      conv_bias + position_embedding for these patch
    #                       rows (padded rows are zero); shared by bb images.
    # o_ref:   (bb, tp, D)
    bb, tp, K = x_ref.shape
    D = w_ref.shape[1]
    x = x_ref[...].reshape(bb * tp, K)            # one large MXU matmul
    acc = jnp.dot(x, w_ref[...], preferred_element_type=jnp.float32)
    acc = acc.reshape(bb, tp, D) + add_ref[...].astype(jnp.float32)[None, :, :]
    o_ref[...] = acc.astype(o_ref.dtype)


def instructblip_vision_embeddings(
    pixel_values,        # [B, 3, H, W]
    patch_weight,        # [D, C, P, P]  Conv2d weight
    patch_bias,          # [D]           Conv2d bias
    class_embedding,     # [1, 1, D]
    position_embedding,  # [1, num_positions, D]
    *,
    patch_size,
    seq_tile=256,
    max_batch_block=8,
    use_bf16_matmul=False,
    vmem_budget_bytes=40 << 20,
):
    target_dtype = patch_weight.dtype
    mxu_dtype = jnp.bfloat16 if use_bf16_matmul else target_dtype

    B, C, H, W = pixel_values.shape
    D = patch_weight.shape[0]
    P = patch_size
    # interpolate_pos_encoding is not implemented -> require exact patch tiling.
    assert H % P == 0 and W % P == 0, "H, W must be divisible by patch_size"
    gh, gw = H // P, W // P
    N = gh * gw                                   # patch rows (no class token)
    K = C * P * P
    K_pad = _round_up(K, 128)                     # lane-align the contraction dim

    in_bytes = jnp.dtype(mxu_dtype).itemsize
    out_bytes = jnp.dtype(target_dtype).itemsize
    sub = 8 if in_bytes >= 4 else (16 if in_bytes == 2 else 32)

    # ---- sequence tiling (class-token-free, minimal padding) ----
    n_seq_tiles = -(-N // seq_tile)
    tp = _round_up(-(-N // n_seq_tiles), sub)

    def vmem_est(bb_, tp_):
        # double-buffered x / w / add / out tiles
        return 2 * (bb_ * tp_ * K_pad * in_bytes
                    + K_pad * D * in_bytes
                    + tp_ * D * out_bytes
                    + bb_ * tp_ * D * out_bytes)

    # ---- batch blocking: largest divisor of B (<= max_batch_block) that fits ----
    bb = 1
    for cand in range(1, min(B, max_batch_block) + 1):
        if B % cand == 0 and vmem_est(cand, tp) <= vmem_budget_bytes:
            bb = cand
    n_batch_tiles = B // bb

    # v7x has 2 TensorCores: make sure the parallel grid has >= 2 steps.
    if n_seq_tiles * n_batch_tiles == 1 and N >= 2 * sub:
        n_seq_tiles = 2
        tp = _round_up(-(-N // 2), sub)
    N_pad = n_seq_tiles * tp

    # ---- wrapper-side layout plumbing (im2col for the non-overlapping conv) ----
    x = pixel_values.astype(mxu_dtype)
    x = x.reshape(B, C, gh, P, gw, P)
    x = x.transpose(0, 2, 4, 1, 3, 5).reshape(B, N, K)
    if K_pad > K:
        x = jnp.pad(x, ((0, 0), (0, 0), (0, K_pad - K)))
    if N_pad > N:
        x = jnp.pad(x, ((0, 0), (0, N_pad - N), (0, 0)))

    # Flattened conv weight as [K_pad, D] (zero rows for the K padding).
    w = patch_weight.reshape(D, K).T.astype(mxu_dtype)
    if K_pad > K:
        w = jnp.pad(w, ((0, K_pad - K), (0, 0)))

    # Per-patch-row additive term (conv bias + position embedding), fused into
    # the kernel epilogue.  Padded rows (if any) stay zero and are sliced off.
    pos = position_embedding[0].astype(target_dtype)                    # [S, D]
    add = patch_bias.reshape(1, D).astype(target_dtype) + pos[1:N + 1]  # [N, D]
    if N_pad > N:
        add = jnp.pad(add, ((0, N_pad - N), (0, 0)))

    vmem_bytes = int(min(vmem_est(bb, tp) + (8 << 20), 64 << 20))

    patches_out = pl.pallas_call(
        _embed_kernel,
        out_shape=jax.ShapeDtypeStruct((B, N_pad, D), target_dtype),
        grid_spec=pltpu.PrefetchScalarGridSpec(
            num_scalar_prefetch=0,
            # batch innermost -> the `add` block index is constant across the
            # inner loop, so it is not re-fetched per image.
            grid=(n_seq_tiles, n_batch_tiles),
            in_specs=[
                pl.BlockSpec((bb, tp, K_pad), lambda s, b: (b, s, 0)),  # patches
                pl.BlockSpec((K_pad, D), lambda s, b: (0, 0)),          # conv weight
                pl.BlockSpec((tp, D), lambda s, b: (s, 0)),             # bias + pos
            ],
            out_specs=pl.BlockSpec((bb, tp, D), lambda s, b: (b, s, 0)),
        ),
        compiler_params=pltpu.CompilerParams(
            dimension_semantics=("parallel", "parallel"),
            vmem_limit_bytes=vmem_bytes,
        ),
    )(x, w, add)

    if N_pad > N:
        patches_out = patches_out[:, :N, :]

    # Class-token row handled in the wrapper (single row per image).
    cls_row = (class_embedding.reshape(1, D).astype(target_dtype) + pos[:1])
    cls = jnp.broadcast_to(cls_row[None, :, :], (B, 1, D)).astype(target_dtype)
    return jnp.concatenate([cls, patches_out], axis=1)


def _reference(pixel_values, patch_weight, patch_bias, class_embedding,
               position_embedding, patch_size):
    """Pure-JAX reference using lax.conv (independent of the kernel's im2col)."""
    B = pixel_values.shape[0]
    D = patch_weight.shape[0]
    conv = jax.lax.conv_general_dilated(
        pixel_values, patch_weight,
        window_strides=(patch_size, patch_size), padding="VALID",
        dimension_numbers=("NCHW", "OIHW", "NCHW"),
        precision=jax.lax.Precision.HIGHEST)
    conv = conv + patch_bias.reshape(1, D, 1, 1)
    patch_embeds = conv.reshape(B, D, -1).transpose(0, 2, 1)            # [B, N, D]
    class_embeds = jnp.broadcast_to(class_embedding, (B, 1, D))
    embeddings = jnp.concatenate([class_embeds, patch_embeds], axis=1)  # [B, S, D]
    S = embeddings.shape[1]
    return embeddings + position_embedding[:, :S, :]


if __name__ == "__main__":
    # Small config consistent with the module: 3-channel image, patchify conv,
    # class token + learned position embeddings.
    batch, channels, image_size, patch_size, hidden = 2, 3, 32, 8, 32
    num_patches = (image_size // patch_size) ** 2
    num_positions = num_patches + 1

    key = jax.random.PRNGKey(0)
    kx, kw, kb, kc, kp = jax.random.split(key, 5)

    pixel_values = jax.random.normal(
        kx, (batch, channels, image_size, image_size), dtype=jnp.float32)
    patch_weight = jax.random.normal(
        kw, (hidden, channels, patch_size, patch_size), dtype=jnp.float32) * 0.02
    patch_bias = jax.random.normal(kb, (hidden,), dtype=jnp.float32) * 0.01
    class_embedding = jax.random.normal(kc, (1, 1, hidden), dtype=jnp.float32)
    position_embedding = jax.random.normal(
        kp, (1, num_positions, hidden), dtype=jnp.float32)

    y_ref = _reference(pixel_values, patch_weight, patch_bias, class_embedding,
                       position_embedding, patch_size)

    # Default path: matmul in the model dtype (f32 here) -> tight tolerance.
    y = instructblip_vision_embeddings(
        pixel_values, patch_weight, patch_bias, class_embedding,
        position_embedding, patch_size=patch_size)
    y = jax.block_until_ready(y)
    assert y.shape == (batch, num_positions, hidden)
    assert jnp.allclose(y, y_ref, atol=1e-3, rtol=1e-3), "mismatch vs reference"

    # bf16-MXU path for f32 checkpoints (perf optimization) -> looser tolerance.
    y_bf16 = instructblip_vision_embeddings(
        pixel_values, patch_weight, patch_bias, class_embedding,
        position_embedding, patch_size=patch_size, use_bf16_matmul=True)
    y_bf16 = jax.block_until_ready(y_bf16)
    assert y_bf16.shape == (batch, num_positions, hidden)
    assert jnp.allclose(y_bf16, y_ref, atol=5e-2, rtol=5e-2), "bf16 path mismatch"

    print("KERNEL_OK")
</pallas_src>

<mosaic_0001>
module attributes {stable_mosaic.version = 11 : i64} {
  func.func @_embed_kernel(%arg0: i32, %arg1: i32, %arg2: memref<2x8x256xf32, #tpu.memory_space<vmem>>, %arg3: memref<256x32xf32, #tpu.memory_space<vmem>>, %arg4: memref<8x32xf32, #tpu.memory_space<vmem>>, %arg5: memref<2x8x32xf32, #tpu.memory_space<vmem>>) attributes {dimension_semantics = [#tpu.dimension_semantics<parallel>, #tpu.dimension_semantics<parallel>], iteration_bounds = array<i64: 2, 1>, scalar_prefetch = 0 : i64, scratch_operands = 0 : i64, tpu.core_type = #tpu.core_type<tc>, window_params = [{transform_indices = @transform_0, window_bounds = array<i64: 2, 8, 256>}, {pipeline_mode = #tpu.pipeline_mode<synchronous>, transform_indices = @transform_1, window_bounds = array<i64: 256, 32>}, {transform_indices = @transform_2, window_bounds = array<i64: 8, 32>}, {transform_indices = @transform_3, window_bounds = array<i64: 2, 8, 32>}]} {
    %c0 = arith.constant 0 : index
    %c0_0 = arith.constant 0 : index
    %c0_1 = arith.constant 0 : index
    %0 = vector.load %arg2[%c0, %c0_0, %c0_1] : memref<2x8x256xf32, #tpu.memory_space<vmem>>, vector<2x8x256xf32>
    %1 = vector.shape_cast %0 : vector<2x8x256xf32> to vector<16x256xf32>
    %c0_2 = arith.constant 0 : index
    %c0_3 = arith.constant 0 : index
    %2 = vector.load %arg3[%c0_2, %c0_3] : memref<256x32xf32, #tpu.memory_space<vmem>>, vector<256x32xf32>
    %cst = arith.constant dense<0.000000e+00> : vector<16x32xf32>
    %3 = tpu.matmul %1, %2, %cst {dimension_numbers = #tpu.dot_dimension_numbers<[1], [0], [0], [1], [0, 0, 1, 1], [], []>} : vector<16x256xf32>, vector<256x32xf32>, vector<16x32xf32> -> vector<16x32xf32>
    %4 = vector.shape_cast %3 : vector<16x32xf32> to vector<2x8x32xf32>
    %c0_4 = arith.constant 0 : index
    %c0_5 = arith.constant 0 : index
    %5 = vector.load %arg4[%c0_4, %c0_5] : memref<8x32xf32, #tpu.memory_space<vmem>>, vector<8x32xf32>
    %6 = vector.shape_cast %5 : vector<8x32xf32> to vector<1x8x32xf32>
    %7 = vector.broadcast %6 : vector<1x8x32xf32> to vector<2x8x32xf32>
    %8 = arith.addf %4, %7 : vector<2x8x32xf32>
    %c0_6 = arith.constant 0 : index
    %c0_7 = arith.constant 0 : index
    %c0_8 = arith.constant 0 : index
    %9 = vector.load %arg5[%c0_6, %c0_7, %c0_8] : memref<2x8x32xf32, #tpu.memory_space<vmem>>, vector<2x8x32xf32>
    tpu.vector_store %arg5[%c0_6, %c0_7, %c0_8], %8 {strides = array<i32>} : memref<2x8x32xf32, #tpu.memory_space<vmem>>, vector<2x8x32xf32>,
    return
  }
  func.func @transform_0(%arg0: i32, %arg1: i32) -> (i32, i32, i32) {
    %c0_i32 = arith.constant 0 : i32
    %c0_i32_0 = arith.constant 0 : i32
    return %arg1, %arg0, %c0_i32 : i32, i32, i32
  }
  func.func @transform_1(%arg0: i32, %arg1: i32) -> (i32, i32) {
    %c0_i32 = arith.constant 0 : i32
    %c0_i32_0 = arith.constant 0 : i32
    %c0_i32_1 = arith.constant 0 : i32
    return %c0_i32, %c0_i32_0 : i32, i32
  }
  func.func @transform_2(%arg0: i32, %arg1: i32) -> (i32, i32) {
    %c0_i32 = arith.constant 0 : i32
    %c0_i32_0 = arith.constant 0 : i32
    return %arg0, %c0_i32 : i32, i32
  }
  func.func @transform_3(%arg0: i32, %arg1: i32) -> (i32, i32, i32) {
    %c0_i32 = arith.constant 0 : i32
    %c0_i32_0 = arith.constant 0 : i32
    return %arg1, %arg0, %c0_i32 : i32, i32, i32
  }
}

</mosaic_0001>

<bundles_post_ra>
// kernel: tpu_custom_call.1
= control target key start
LH: loop header
LB: loop body
LE: loop exit
PB: predicated region body
PF: predicated region fallthrough
CT: control target
= control target key end

     0   :  { %8 = vsyncpa [#allocation4], 0  ;;  %s849_s0 = inlined_call_operand.vmem [shape: f32[2,16,256], index: 0, kind: input, shape index: {}]   ;;  %s850_s1 = inlined_call_operand.vmem [shape: f32[256,32], index: 1, kind: input, shape index: {}]   ;;  %s851_s2 = inlined_call_operand.vmem [shape: f32[16,32], index: 2, kind: input, shape index: {}]   ;;  %s852_s3 = inlined_call_operand.hbm [shape: f32[2,16,32], index: 3, kind: output, shape index: {}]  }
   0x1   :  { %10 = vsyncpa [#allocation4 + $0x1], 0  ;;  %s641_s12 = smov 0   ;;  %s643_s13 = smov 0  }
   0x2   :  { %s645_s14 = smov 0   ;;  %s647_s15 = smov 0  }
   0x3   :  { %s649_s16 = smov 0   ;;  %s651_s17 = smov 0  }
   0x4 LB: > { %s432_s18 = sadd.s32 4294967295, %s616_s17   ;;  %s433_s19 = sadd.s32 4294967294, %s616_s17   ;;  %s616_s17 = sphi %s651_s17, %s16_s17   ;;  %s612_s16 = sphi %s649_s16, %s859_s16   ;;  %s608_s15 = sphi %s647_s15, %s858_s15   ;;  %s604_s14 = sphi %s645_s14, %s857_s14   ;;  %s600_s13 = sphi %s643_s13, %s856_s13   ;;  %s596_s12 = sphi %s641_s12, %s855_s12  }
   0x5   : > { %s28_s20 = sadd.s32 1, %s612_s16  ;;  %s37_s21 = sadd.s32 1, %s604_s14 }
   0x6   : > { %p30_p0 = scmp.ge.s32.totalorder %s28_s20, 2  ;;  %p44_p1 = scmp.ne.s32.totalorder %s604_s14, %s600_s13 }
   0x7   : > { %p45_p2 = scmp.eq.s32.totalorder %s616_s17, 0  ;;  %p123_p3 = scmp.eq.s32.totalorder %s432_s18, 1 }
   0x8   : > { %s861_s20 = smov (%p30_p0, %s28_s20), 0  ;;  %p128_p6 = scmp.ne.s32.totalorder %s600_s13, %s596_s12 }
   0x9   : > { %p46_p4 = por %p45_p2, %p44_p1  ;;  %p680_p5 = por %p123_p3, %p44_p1 }
   0xa   : > { %s33_s23 = ssub.s32 %s612_s16, %s861_s20  ;;  %p129_p8 = scmp.eq.s32.totalorder %s433_s19, 1 }
   0xb   : > { %p35_p7 = scmp.eq.s32.totalorder %s33_s23, 0  ;;  %p435_p10 = scmp.ge.s32.totalorder %s616_s17, 2 }
   0xc   : > { %p691_p9 = por %p129_p8, %p128_p6 }
   0xd   : > { %s689_s24 = scalar_select %p35_p7, %s604_s14, %s37_s21  }
   0xe   : > { %148 = sbr.rel (%p435_p10) target bundleno = 27 (0x1b), region = 20 }
  0x13   : > { %151 = sbr.rel (!%p46_p4) target bundleno = 27 (0x1b), region = 24  ;;  %s153_s26 = sand.u32 (%p46_p4), 1, %s604_s14  }
  0x14   : > { %s447_s27 = sshll.u32 (%p46_p4), %s612_s16, 4  ;;  %s436_s28 = sshll.u32 (%p46_p4), %s153_s26, 5 }
  0x15   : > { %s161_s4 = scalar_lea.vmem (%p46_p4), %s849_s0, %s447_s27  ;;  %s155_s5 = scalar_lea.vmem (%p46_p4), [#allocation2], %s436_s28 }
  0x16   : > { %v174_v0 = vld [vmem:[%s161_s4] sm:$0xff] (%p46_p4)  ;;  %v176_v1 = vld [vmem:[%s161_s4 + $0x8] sm:$0xff] (%p46_p4) }
  0x17   : > { %v178_v2 = vld [vmem:[%s161_s4 + $0x20] sm:$0xff] (%p46_p4)  ;;  %175 = vst [vmem:[%s155_s5] sm:$0xff] (%p46_p4), %v174_v0  ;;  %v180_v3 = vld [vmem:[%s161_s4 + $0x28] sm:$0xff] (%p46_p4) }
  0x18   : > { %177 = vst [vmem:[%s155_s5 + $0x8] sm:$0xff] %v176_v1 }
  0x19   : > { %179 = vst [vmem:[%s155_s5 + $0x10] sm:$0xff] %v178_v2 }
  0x1a   : > { %181 = vst [vmem:[%s155_s5 + $0x18] sm:$0xff] %v180_v3 }
  0x1b PF: > { %p439_p11 = scmp.ge.s32.totalorder %s616_s17, 1  ;;  %p193_p12 = scmp.lt.s32.totalorder %s616_s17, 3 }
  0x1d   : > { %p194_p13 = pnand %p439_p11, %p193_p12 }
  0x1e   : > { %s778_s30 = sand.u32 (!%p194_p13), 1, %s600_s13   ;;  %p228_p0 = scmp.lt.s32.totalorder (!%p194_p13), %s608_s15, 1 }
  0x1f   : > { %197 = sbr.rel (%p194_p13) target bundleno = 210 (0xd2), region = 51  ;;  %s440_s8 = sshll.u32 (!%p194_p13), %s778_s30, 5 }
  0x20   : > { %s202_s5 = scalar_lea.vmem (!%p194_p13), [#allocation2], %s440_s8  ;;  %s441_s8 = sshll.u32 (!%p194_p13), %s778_s30, 4 }
  0x21   : > { %s444_s18 = sshll.u32 (!%p194_p13), %s608_s15, 3  ;;  %s226_s26 = scalar_lea.vmem (!%p194_p13), [#allocation3], %s441_s8 }
  0x22   : > { %s335_s23 = scalar_lea.hbm (!%p194_p13), %s852_s3, %s444_s18  ;;  %s336_s27 = sshll.u32 (!%p194_p13), %s226_s26, 4  ;;  %s337_s27 = int_to_ptr.vmem [resolvable:$true] %s336_s27 }
  0x23   : > { %s338_s28 = sshll.u32 (!%p194_p13), %s335_s23, 4  ;;  %s339_s28 = int_to_ptr.hbm [resolvable:$true] %s338_s28 }
  0x24   : > { %v252_v4 = vld [vmem:[%s850_s1 + $0x78] sm:$0xff]  ;;  %v251_v6 = vld [vmem:[%s850_s1 + $0x70] sm:$0xff]  ;;  %v250_v8 = vld [vmem:[%s850_s1 + $0x68] sm:$0xff]  ;;  %s229_s6 = scalar_select %p228_p0, %s608_s15, 1  ;;  %vm318_vm0 = vcmask 261120  }
  0x25   : > { %v268_v5 = vld [vmem:[%s850_s1 + $0xf8] sm:$0xff]  ;;  %448 = vmatpush.msra.mxu2 %v252_v4  ;;  %v267_v7 = vld [vmem:[%s850_s1 + $0xf0] sm:$0xff]  ;;  %v266_v9 = vld [vmem:[%s850_s1 + $0xe8] sm:$0xff]  ;;  %269 = vmatpush.msra.mxu0 %v252_v4  ;;  %s322_s15 = scalar_lea.sflag [#allocation4], %s778_s30  ;;  %s552_s29 = sshra.s32 %s339_s28, 4  ;;  %s553_s29 = int_to_ptr.hbm [resolvable:$true] %s552_s29 }
  0x26   : > { %464 = vmatpush.msra.mxu3 %v268_v5  ;;  %292 = vmatpush.msra.mxu1 %v268_v5  ;;  %v249_v10 = vld [vmem:[%s850_s1 + $0x60] sm:$0xff]  ;;  %v248_v12 = vld [vmem:[%s850_s1 + $0x58] sm:$0xff]  ;;  %v247_v14 = vld [vmem:[%s850_s1 + $0x50] sm:$0xff]  ;;  %s442_s7 = sshll.u32 %s229_s6, 3  ;;  %s554_s4 = scalar_lea.hbm %s553_s29, 16 }
  0x27   : > { %449 = vmatpush.msra.mxu2 %v251_v6  ;;  %v265_v11 = vld [vmem:[%s850_s1 + $0xe0] sm:$0xff]  ;;  %270 = vmatpush.msra.mxu0 %v251_v6  ;;  %v264_v13 = vld [vmem:[%s850_s1 + $0xd8] sm:$0xff]  ;;  %v263_v15 = vld [vmem:[%s850_s1 + $0xd0] sm:$0xff]  ;;  %s231_s11 = scalar_lea.vmem %s851_s2, %s442_s7  ;;  %p555_p1 = scmp.ne.s32.totalorder %s553_s29, %s554_s4 }
  0x28   : > { %465 = vmatpush.msra.mxu3 %v267_v7  ;;  %293 = vmatpush.msra.mxu1 %v267_v7  ;;  %v246_v16 = vld [vmem:[%s850_s1 + $0x48] sm:$0xff]  ;;  %v245_v18 = vld [vmem:[%s850_s1 + $0x40] sm:$0xff]  ;;  %v244_v20 = vld [vmem:[%s850_s1 + $0x38] sm:$0xff]  ;;  %s558_s7 = scalar_lea.hbm %s852_s3, 32  ;;  %p559_p4 = scmp.lt.s32.totalorder %s553_s29, %s852_s3 }
  0x29   : > { %450 = vmatpush.msra.mxu2 %v250_v8  ;;  %271 = vmatpush.msra.mxu0 %v250_v8  ;;  %v262_v17 = vld [vmem:[%s850_s1 + $0xc8] sm:$0xff]  ;;  %v261_v19 = vld [vmem:[%s850_s1 + $0xc0] sm:$0xff]  ;;  %v260_v21 = vld [vmem:[%s850_s1 + $0xb8] sm:$0xff]  ;;  %p556_p2 = pnand %p555_p1, %p680_p5  ;;  %p560_p6 = scmp.lt.s32.totalorder %s558_s7, %s554_s4 }
  0x2a   : > { %466 = vmatpush.msra.mxu3 %v266_v9  ;;  %294 = vmatpush.msra.mxu1 %v266_v9  ;;  %v243_v22 = vld [vmem:[%s850_s1 + $0x30] sm:$0xff]  ;;  %v242_v24 = vld [vmem:[%s850_s1 + $0x28] sm:$0xff]  ;;  %v241_v26 = vld [vmem:[%s850_s1 + $0x20] sm:$0xff] }
  0x2b   : > { %451 = vmatpush.msra.mxu2 %v249_v10  ;;  %272 = vmatpush.msra.mxu0 %v249_v10  ;;  %v259_v23 = vld [vmem:[%s850_s1 + $0xb0] sm:$0xff]  ;;  %v258_v25 = vld [vmem:[%s850_s1 + $0xa8] sm:$0xff]  ;;  %v257_v27 = vld [vmem:[%s850_s1 + $0xa0] sm:$0xff]  ;;  %p557_p3 = pneg %p556_p2  ;;  %p561_p7 = por %p560_p6, %p559_p4 }
  0x2c   : > { %467 = vmatpush.msra.mxu3 %v265_v11  ;;  %295 = vmatpush.msra.mxu1 %v265_v11  ;;  %v240_v28 = vld [vmem:[%s850_s1 + $0x18] sm:$0xff]  ;;  %v239_v30 = vld [vmem:[%s850_s1 + $0x10] sm:$0xff]  ;;  %v238_v32 = vld [vmem:[%s850_s1 + $0x8] sm:$0xff] }
  0x2d   : > { %452 = vmatpush.msra.mxu2 %v248_v12  ;;  %273 = vmatpush.msra.mxu0 %v248_v12  ;;  %v256_v29 = vld [vmem:[%s850_s1 + $0x98] sm:$0xff]  ;;  %v255_v31 = vld [vmem:[%s850_s1 + $0x90] sm:$0xff]  ;;  %v254_v33 = vld [vmem:[%s850_s1 + $0x88] sm:$0xff]  ;;  %p562_p8 = pnand %p561_p7, %p557_p3 }
  0x2e   : > { %468 = vmatpush.msra.mxu3 %v264_v13  ;;  %296 = vmatpush.msra.mxu1 %v264_v13  ;;  %v237_v34 = vld [vmem:[%s850_s1] sm:$0xff]  ;;  %v235_v36 = vld [vmem:[%s202_s5 + $0x10] sm:$0xff]  ;;  %v236_v37 = vld [vmem:[%s202_s5 + $0x18] sm:$0xff] }
  0x2f   : > { %453 = vmatpush.msra.mxu2 %v247_v14  ;;  %274 = vmatpush.msra.mxu0 %v247_v14  ;;  %v253_v35 = vld [vmem:[%s850_s1 + $0x80] sm:$0xff]  ;;  %v234_v39 = vld [vmem:[%s202_s5 + $0x8] sm:$0xff] }
  0x30   : > { %469 = vmatpush.msra.mxu3 %v263_v15  ;;  %297 = vmatpush.msra.mxu1 %v263_v15  ;;  %v233_v38 = vld [vmem:[%s202_s5] sm:$0xff] }
  0x31   : > { %454 = vmatpush.msra.mxu2 %v246_v16  ;;  %275 = vmatpush.msra.mxu0 %v246_v16  ;;  %v315_v42 = vld [vmem:[%s231_s11] sm:$0xff] }
  0x32   : > { %470 = vmatpush.msra.mxu3 %v262_v17  ;;  %298 = vmatpush.msra.mxu1 %v262_v17 }
  0x33   : > { %455 = vmatpush.msra.mxu2 %v245_v18  ;;  %276 = vmatpush.msra.mxu0 %v245_v18 }
  0x34   : > { %471 = vmatpush.msra.mxu3 %v261_v19  ;;  %299 = vmatpush.msra.mxu1 %v261_v19 }
  0x35   : > { %456 = vmatpush.msra.mxu2 %v244_v20  ;;  %277 = vmatpush.msra.mxu0 %v244_v20 }
  0x36   : > { %472 = vmatpush.msra.mxu3 %v260_v21  ;;  %300 = vmatpush.msra.mxu1 %v260_v21 }
  0x37   : > { %457 = vmatpush.msra.mxu2 %v243_v22  ;;  %278 = vmatpush.msra.mxu0 %v243_v22 }
  0x38   : > { %473 = vmatpush.msra.mxu3 %v259_v23  ;;  %301 = vmatpush.msra.mxu1 %v259_v23 }
  0x39   : > { %458 = vmatpush.msra.mxu2 %v242_v24  ;;  %279 = vmatpush.msra.mxu0 %v242_v24 }
  0x3a   : > { %474 = vmatpush.msra.mxu3 %v258_v25  ;;  %302 = vmatpush.msra.mxu1 %v258_v25 }
  0x3b   : > { %459 = vmatpush.msra.mxu2 %v241_v26  ;;  %280 = vmatpush.msra.mxu0 %v241_v26 }
  0x3c   : > { %475 = vmatpush.msra.mxu3 %v257_v27  ;;  %303 = vmatpush.msra.mxu1 %v257_v27 }
  0x3d   : > { %460 = vmatpush.msra.mxu2 %v240_v28  ;;  %281 = vmatpush.msra.mxu0 %v240_v28 }
  0x3e   : > { %476 = vmatpush.msra.mxu3 %v256_v29  ;;  %304 = vmatpush.msra.mxu1 %v256_v29 }
  0x3f   : > { %461 = vmatpush.msra.mxu2 %v239_v30  ;;  %282 = vmatpush.msra.mxu0 %v239_v30 }
  0x40   : > { %477 = vmatpush.msra.mxu3 %v255_v31  ;;  %305 = vmatpush.msra.mxu1 %v255_v31 }
  0x41   : > { %462 = vmatpush.msra.mxu2 %v238_v32  ;;  %283 = vmatpush.msra.mxu0 %v238_v32 }
  0x42   : > { %478 = vmatpush.msra.mxu3 %v254_v33  ;;  %306 = vmatpush.msra.mxu1 %v254_v33 }
  0x43   : > { %463 = vmatpush.msra.mxu2 %v237_v34  ;;  %284 = vmatpush.msra.mxu0 %v237_v34 }
  0x44   : > { %479 = vmatpush.msra.mxu3 %v253_v35  ;;  %288 = vmatmul.f32.vlgmr.msra.gmra.mxu2 %v235_v36 }
  0x45   : > { %311 = vmatmul.f32.vlgmr.msra.gmra.mxu3 %v236_v37  ;;  %307 = vmatpush.msra.mxu1 %v253_v35 }
  0x46   : > { %285 = vmatmul.f32.vlgmr.msra.gmra.mxu0 %v233_v38  ;;  %308 = vmatmul.f32.vlgmr.msra.gmra.mxu1 %v234_v39 }
  0xc3   : > { %v286_v40 = vpop.f32.mrf.mxu0  ;;  %v309_v41 = vpop.f32.mrf.mxu1 }
  0xc4   : > { %v310_v43 = vadd.f32 %v309_v41, %v286_v40 }
  0xc6   : > { %v316_v44 = vadd.f32 %v315_v42, %v310_v43 }
  0xc7   : > { %v289_v45 = vpop.f32.mrf.mxu2 }
  0xc8   : > { %v312_v46 = vpop.f32.mrf.mxu3  ;;  %319 = vst.msk [vmem:[%s226_s26] sm:$0xff] %vm318_vm0, %v316_v44 }
  0xc9   : > { %v313_v47 = vadd.f32 %v312_v46, %v289_v45 }
  0xcb   : > { %v317_v48 = vadd.f32 %v315_v42, %v313_v47 }
  0xcd   : > { %320 = vst.msk [vmem:[%s226_s26 + $0x8] sm:$0xff] %vm318_vm0, %v317_v48 }
  0xce   : > { %565 = shalt.err (!%p562_p8)
}
  0xcf   : > { %s618_s30 = smov 128   ;;  %s619_s10 = smov 256  }
  0xd0   : > { %s620_s11 = smov 8  }
  0xd1   : > { %480 = dma.vmem_to_hbm [thread:$0]  (%p680_p5), %s337_s27, 256, %s339_s28, %s322_s15, %s618_s30, %s619_s10, %s620_s11  }
  0xd2 PF: > { %s353_s18 = sand.u32 1, %s596_s12   ;;  %p483_p11 = pnand %p435_p10, %p691_p9 }
  0xd3   : > { %s354_s19 = scalar_lea.sflag [#allocation4], %s353_s18 }
  0xd4   : > { %p484_p12 = pneg %p483_p11 }
  0xd6   : > { %591 = dma.done.wait (%p484_p12), %s354_s19, 256  }
  0xd7   : > { %593 = vsyncadd (%p484_p12), %s354_s19, 4294967040  ;;  %s16_s17 = sadd.s32 1, %s616_s17   ;;  %s855_s12 = smov %s600_s13 }
  0xd8   : > { %p13_p13 = scmp.ge.s32.totalorder %s16_s17, 4   ;;  %s856_s13 = smov %s604_s14 }
  0xd9   : > { %s857_s14 = smov %s689_s24  ;;  %s858_s15 = smov %s612_s16 }
  0xda   : > { %s859_s16 = smov %s861_s20  ;;  %15 = sbr.rel (!%p13_p13) target bundleno = 4 (0x4), region = 98 }
  0xdf   :  { %360 = vsyncpa [#allocation4], 1 }
  0xe0   :  { %362 = vsyncpa [#allocation4 + $0x1], 1 }

</bundles_post_ra>
